<compile_context>
chip_gen: v5e
topology: v5e:2x2
jax: 0.10.0
libtpu: 0.0.40
codegen_flags: <defaults>
</compile_context>

<pallas_src>
import jax
import jax.numpy as jnp
from jax import lax
from jax.experimental import pallas as pl
from jax.experimental.pallas import tpu as pltpu


def _round_up(n, m):
    return ((n + m - 1) // m) * m


# ---------------------------------------------------------------------------
# Kernels
# ---------------------------------------------------------------------------
def _linear_mlp_kernel(x_ref, w1_ref, b1_ref, w2_ref, b2_ref, o_ref):
    """'linear' path.  Shapes (per block):
         x : (bt, C)    w1: (C, Hp)   b1: (1, Hp)
         w2: (Hp, Op)   b2: (1, Op)   o : (bt, Op)   (Op is a multiple of 128)
    """
    x = x_ref[...]
    h = jnp.dot(x, w1_ref[...], preferred_element_type=jnp.float32)
    h = jnp.maximum(h + b1_ref[...], 0.0)          # ReLU; Dropout = identity (inference)
    y = jnp.dot(h.astype(w2_ref.dtype), w2_ref[...],
                preferred_element_type=jnp.float32) + b2_ref[...]
    o_ref[...] = y.astype(o_ref.dtype)


def _conv_mlp_kernel(x_ref, w1_ref, b1_ref, w2_ref, b2_ref, o_ref):
    """'convolutional' (1x1x1) path, NC(S) layout, channel axis contracted in-kernel.
         x : (1, C, st)   w1: (C, Hp)   b1: (Hp, 1)
         w2: (Hp, Op)     b2: (Op, 1)   o : (1, Op, st)
    """
    x = x_ref[0]                                                    # (C, st)
    h = lax.dot_general(w1_ref[...], x, (((0,), (0,)), ((), ())),
                        preferred_element_type=jnp.float32)         # (Hp, st)
    h = jnp.maximum(h + b1_ref[...], 0.0)
    y = lax.dot_general(w2_ref[...], h.astype(w2_ref.dtype),
                        (((0,), (0,)), ((), ())),
                        preferred_element_type=jnp.float32)         # (Op, st)
    o_ref[0] = (y + b2_ref[...]).astype(o_ref.dtype)


# ---------------------------------------------------------------------------
# pallas_call wrappers
# ---------------------------------------------------------------------------
def _linear_forward(x2d, w1, b1, w2, b2, *, batch_tile=1024):
    """x2d: (N, C) -> (N, Op)."""
    N, C = x2d.shape
    Hp = w1.shape[1]
    Op = w2.shape[1]

    # Full-extent block for small N (no padding needed); otherwise an 8-aligned tile;
    # a non-dividing tail is handled by Pallas's padded last block (rows past N dropped).
    bt = N if N <= batch_tile else batch_tile
    grid = (pl.cdiv(N, bt),)

    return pl.pallas_call(
        _linear_mlp_kernel,
        out_shape=jax.ShapeDtypeStruct((N, Op), x2d.dtype),
        grid_spec=pltpu.PrefetchScalarGridSpec(
            num_scalar_prefetch=0,
            grid=grid,
            in_specs=[
                pl.BlockSpec((bt, C), lambda i: (i, 0)),    # x rows
                pl.BlockSpec((C, Hp), lambda i: (0, 0)),    # fused W1 (in, out)
                pl.BlockSpec((1, Hp), lambda i: (0, 0)),    # fused b1
                pl.BlockSpec((Hp, Op), lambda i: (0, 0)),   # block-diag W2
                pl.BlockSpec((1, Op), lambda i: (0, 0)),    # fused b2
            ],
            out_specs=pl.BlockSpec((bt, Op), lambda i: (i, 0)),
        ),
        compiler_params=pltpu.CompilerParams(
            dimension_semantics=("parallel",)),
    )(x2d, w1, b1, w2, b2)


def _conv_forward(x3, w1, b1, w2, b2, *, spatial_tile=1024):
    """x3: (B, C, S) NC(S) layout -> (B, Op, S)."""
    B, C, S = x3.shape
    Hp = w1.shape[1]
    Op = w2.shape[1]

    st = S if S <= spatial_tile else spatial_tile   # spatial_tile is a multiple of 128
    grid = (B, pl.cdiv(S, st))

    return pl.pallas_call(
        _conv_mlp_kernel,
        out_shape=jax.ShapeDtypeStruct((B, Op, S), x3.dtype),
        grid_spec=pltpu.PrefetchScalarGridSpec(
            num_scalar_prefetch=0,
            grid=grid,
            in_specs=[
                pl.BlockSpec((1, C, st), lambda b, s: (b, 0, s)),   # x (NC(S))
                pl.BlockSpec((C, Hp), lambda b, s: (0, 0)),         # fused W1
                pl.BlockSpec((Hp, 1), lambda b, s: (0, 0)),         # fused b1 (col)
                pl.BlockSpec((Hp, Op), lambda b, s: (0, 0)),        # block-diag W2
                pl.BlockSpec((Op, 1), lambda b, s: (0, 0)),         # fused b2 (col)
            ],
            out_specs=pl.BlockSpec((1, Op, st), lambda b, s: (b, 0, s)),
        ),
        compiler_params=pltpu.CompilerParams(
            dimension_semantics=("parallel", "parallel")),
    )(x3, w1, b1, w2, b2)


# ---------------------------------------------------------------------------
# One-time fused-parameter construction (hoisted out of the forward path)
# ---------------------------------------------------------------------------
def _build_fused_params(branch_params, hid_pad_mult, out_pad_mult, dtype):
    """branch_params: list of dicts with PyTorch-convention shapes:
         w1: (hid, in)  b1: (hid,)  w2: (out, hid)  b2: (out,)
       Returns fused, pre-transposed, zero-padded operands."""
    in_dim = branch_params[0]["w1"].shape[1]
    hid_dims = [p["w1"].shape[0] for p in branch_params]
    out_dims = [p["w2"].shape[0] for p in branch_params]
    Hsum, Osum = sum(hid_dims), sum(out_dims)
    Hp = _round_up(Hsum, hid_pad_mult)
    Op = _round_up(Osum, out_pad_mult)

    w1f = jnp.zeros((in_dim, Hp), dtype)
    b1f = jnp.zeros((Hp,), dtype)
    w2bd = jnp.zeros((Hp, Op), dtype)
    b2f = jnp.zeros((Op,), dtype)
    h_off = o_off = 0
    for p in branch_params:
        hid, out = p["w1"].shape[0], p["w2"].shape[0]
        w1f = w1f.at[:, h_off:h_off + hid].set(p["w1"].T.astype(dtype))
        b1f = b1f.at[h_off:h_off + hid].set(p["b1"].astype(dtype))
        w2bd = w2bd.at[h_off:h_off + hid, o_off:o_off + out].set(p["w2"].T.astype(dtype))
        b2f = b2f.at[o_off:o_off + out].set(p["b2"].astype(dtype))
        h_off += hid
        o_off += out
    return w1f, b1f, w2bd, b2f, out_dims


def make_last_layer(params, *, layer_type=("linear", "linear"),
                    enable_multibranch_ffr=True, enable_multibranch_ifr=True,
                    batch_tile=1024, spatial_tile=1024):
    """Builds the fused weights ONCE and returns a jitted forward(x)."""
    if layer_type[0] != layer_type[1]:
        raise NotImplementedError("mixed fc1/fc2 layer types are not supported")
    if layer_type[0] not in ("linear", "convolutional"):
        raise NotImplementedError(layer_type)

    branches = ["label"]
    if enable_multibranch_ffr:
        branches.append("FFR")
    if enable_multibranch_ifr:
        branches.append("iFR")
    bp = [params[b] for b in branches]
    dtype = bp[0]["w1"].dtype            # fused weights kept in the weights' dtype

    is_linear = layer_type[0] == "linear"
    # linear path: Osum is the lane axis -> pad to 128.  conv path: Osum is sublane -> 8.
    out_mult = 128 if is_linear else 8
    w1f, b1f, w2bd, b2f, out_dims = _build_fused_params(bp, 128, out_mult, dtype)

    if is_linear:
        b1f = b1f.reshape(1, -1)
        b2f = b2f.reshape(1, -1)
    else:
        b1f = b1f.reshape(-1, 1)
        b2f = b2f.reshape(-1, 1)
    out_dims = tuple(out_dims)

    def forward(x):
        if is_linear:
            lead = x.shape[:-1]
            x2d = x.reshape(-1, x.shape[-1])
            y = _linear_forward(x2d, w1f, b1f, w2bd, b2f, batch_tile=batch_tile)
            outs, off = [], 0
            for od in out_dims:
                outs.append(y[:, off:off + od].reshape(lead + (od,)))
                off += od
        else:
            # 1x1x1 Conv3d == pointwise linear over channels; keep NCDHW layout,
            # only a contiguous reshape (B, C, T, H, W) -> (B, C, S).
            B, C = x.shape[0], x.shape[1]
            spatial = x.shape[2:]
            x3 = x.reshape(B, C, -1)
            y = _conv_forward(x3, w1f, b1f, w2bd, b2f, spatial_tile=spatial_tile)
            outs, off = [], 0
            for od in out_dims:
                outs.append(y[:, off:off + od, :].reshape((B, od) + spatial))
                off += od
        return tuple(outs) if len(outs) > 1 else outs[0]

    return jax.jit(forward)


# ---------------------------------------------------------------------------
# Pure-JAX reference (mirrors the PyTorch module at inference)
# ---------------------------------------------------------------------------
def _reference_branch(x2d, p):
    h = jnp.maximum(x2d @ p["w1"].T + p["b1"], 0.0)
    return h @ p["w2"].T + p["b2"]


def _reference_forward(x, params, *, layer_type, enable_multibranch_ffr,
                       enable_multibranch_ifr):
    branches = ["label"]
    if enable_multibranch_ffr:
        branches.append("FFR")
    if enable_multibranch_ifr:
        branches.append("iFR")
    if layer_type[0] == "linear":
        lead = x.shape[:-1]
        x2d = x.reshape(-1, x.shape[-1])
        outs = [_reference_branch(x2d, params[b]).reshape(lead + (-1,))
                for b in branches]
    else:
        B, C, T, H, W = x.shape
        x2d = jnp.transpose(x, (0, 2, 3, 4, 1)).reshape(-1, C)
        outs = []
        for b in branches:
            y = _reference_branch(x2d, params[b]).reshape(B, T, H, W, -1)
            outs.append(jnp.transpose(y, (0, 4, 1, 2, 3)))
    return tuple(outs) if len(outs) > 1 else outs[0]


# ---------------------------------------------------------------------------
# Deterministic synthetic parameters (PyTorch Linear / Conv3d-1x1x1 shapes)
# ---------------------------------------------------------------------------
def init_params(key, in_dim, out_dim):
    hid = in_dim // 2
    params = {}
    for name, od in out_dim.items():
        key, k1, k2, k3, k4 = jax.random.split(key, 5)
        s1 = 1.0 / (in_dim ** 0.5)
        s2 = 1.0 / (hid ** 0.5)
        params[name] = {
            "w1": s1 * jax.random.normal(k1, (hid, in_dim), jnp.float32),
            "b1": s1 * jax.random.normal(k2, (hid,), jnp.float32),
            "w2": s2 * jax.random.normal(k3, (od, hid), jnp.float32),
            "b2": s2 * jax.random.normal(k4, (od,), jnp.float32),
        }
    return params


if __name__ == "__main__":
    in_dim = 64
    out_dim = {"label": 2, "FFR": 1, "iFR": 1}

    key = jax.random.PRNGKey(0)
    kx1, kx2, kp = jax.random.split(key, 3)
    params = init_params(kp, in_dim, out_dim)

    # --- 'linear' type: x is (batch, in_dim) --------------------------------
    x_lin = jax.random.normal(kx1, (16, in_dim), jnp.float32)
    fwd_lin = make_last_layer(params, layer_type=("linear", "linear"),
                              enable_multibranch_ffr=True,
                              enable_multibranch_ifr=True)
    out_lin = jax.block_until_ready(fwd_lin(x_lin))
    ref_lin = _reference_forward(x_lin, params, layer_type=("linear", "linear"),
                                 enable_multibranch_ffr=True,
                                 enable_multibranch_ifr=True)
    assert out_lin[0].shape == (16, 2) and out_lin[1].shape == (16, 1) \
        and out_lin[2].shape == (16, 1)
    for o, r in zip(out_lin, ref_lin):
        if not bool(jnp.allclose(o, r, atol=1e-4, rtol=1e-4)):
            raise AssertionError("Pallas (linear) output does not match reference")

    # --- 'convolutional' type: x is (B, C, T, H, W), 1x1x1 convs ------------
    x_conv = jax.random.normal(kx2, (2, in_dim, 4, 4, 4), jnp.float32)
    fwd_conv = make_last_layer(params,
                               layer_type=("convolutional", "convolutional"),
                               enable_multibranch_ffr=True,
                               enable_multibranch_ifr=True)
    out_conv = jax.block_until_ready(fwd_conv(x_conv))
    ref_conv = _reference_forward(x_conv, params,
                                  layer_type=("convolutional", "convolutional"),
                                  enable_multibranch_ffr=True,
                                  enable_multibranch_ifr=True)
    assert out_conv[0].shape == (2, 2, 4, 4, 4) and out_conv[1].shape == (2, 1, 4, 4, 4)
    for o, r in zip(out_conv, ref_conv):
        if not bool(jnp.allclose(o, r, atol=1e-4, rtol=1e-4)):
            raise AssertionError("Pallas (conv) output does not match reference")

    print("KERNEL_OK")
</pallas_src>

<mosaic_0001>
module attributes {stable_mosaic.version = 11 : i64} {
  func.func @_linear_mlp_kernel(%arg0: i32, %arg1: memref<16x64xf32, #tpu.memory_space<vmem>>, %arg2: memref<64x128xf32, #tpu.memory_space<vmem>>, %arg3: memref<1x128xf32, #tpu.memory_space<vmem>>, %arg4: memref<128x128xf32, #tpu.memory_space<vmem>>, %arg5: memref<1x128xf32, #tpu.memory_space<vmem>>, %arg6: memref<16x128xf32, #tpu.memory_space<vmem>>) attributes {dimension_semantics = [#tpu.dimension_semantics<parallel>], iteration_bounds = array<i64: 1>, scalar_prefetch = 0 : i64, scratch_operands = 0 : i64, tpu.core_type = #tpu.core_type<tc>, window_params = [{transform_indices = @transform_0, window_bounds = array<i64: 16, 64>}, {pipeline_mode = #tpu.pipeline_mode<synchronous>, transform_indices = @transform_1, window_bounds = array<i64: 64, 128>}, {pipeline_mode = #tpu.pipeline_mode<synchronous>, transform_indices = @transform_2, window_bounds = array<i64: 1, 128>}, {pipeline_mode = #tpu.pipeline_mode<synchronous>, transform_indices = @transform_3, window_bounds = array<i64: 128, 128>}, {pipeline_mode = #tpu.pipeline_mode<synchronous>, transform_indices = @transform_4, window_bounds = array<i64: 1, 128>}, {transform_indices = @transform_5, window_bounds = array<i64: 16, 128>}]} {
    %c0 = arith.constant 0 : index
    %c0_0 = arith.constant 0 : index
    %0 = vector.load %arg1[%c0, %c0_0] : memref<16x64xf32, #tpu.memory_space<vmem>>, vector<16x64xf32>
    %c0_1 = arith.constant 0 : index
    %c0_2 = arith.constant 0 : index
    %1 = vector.load %arg2[%c0_1, %c0_2] : memref<64x128xf32, #tpu.memory_space<vmem>>, vector<64x128xf32>
    %cst = arith.constant dense<0.000000e+00> : vector<16x128xf32>
    %2 = tpu.matmul %0, %1, %cst {dimension_numbers = #tpu.dot_dimension_numbers<[1], [0], [0], [1], [0, 0, 1, 1], [], []>} : vector<16x64xf32>, vector<64x128xf32>, vector<16x128xf32> -> vector<16x128xf32>
    %c0_3 = arith.constant 0 : index
    %c0_4 = arith.constant 0 : index
    %3 = vector.load %arg3[%c0_3, %c0_4] : memref<1x128xf32, #tpu.memory_space<vmem>>, vector<1x128xf32>
    %4 = vector.broadcast %3 : vector<1x128xf32> to vector<16x128xf32>
    %5 = arith.addf %2, %4 : vector<16x128xf32>
    %cst_5 = arith.constant 0.000000e+00 : f32
    %6 = vector.broadcast %cst_5 : f32 to vector<16x128xf32>
    %7 = arith.maximumf %5, %6 : vector<16x128xf32>
    %c0_6 = arith.constant 0 : index
    %c0_7 = arith.constant 0 : index
    %8 = vector.load %arg4[%c0_6, %c0_7] : memref<128x128xf32, #tpu.memory_space<vmem>>, vector<128x128xf32>
    %cst_8 = arith.constant dense<0.000000e+00> : vector<16x128xf32>
    %9 = tpu.matmul %7, %8, %cst_8 {dimension_numbers = #tpu.dot_dimension_numbers<[1], [0], [0], [1], [0, 0, 1, 1], [], []>} : vector<16x128xf32>, vector<128x128xf32>, vector<16x128xf32> -> vector<16x128xf32>
    %c0_9 = arith.constant 0 : index
    %c0_10 = arith.constant 0 : index
    %10 = vector.load %arg5[%c0_9, %c0_10] : memref<1x128xf32, #tpu.memory_space<vmem>>, vector<1x128xf32>
    %11 = vector.broadcast %10 : vector<1x128xf32> to vector<16x128xf32>
    %12 = arith.addf %9, %11 : vector<16x128xf32>
    %c0_11 = arith.constant 0 : index
    %c0_12 = arith.constant 0 : index
    %13 = vector.load %arg6[%c0_11, %c0_12] : memref<16x128xf32, #tpu.memory_space<vmem>>, vector<16x128xf32>
    tpu.vector_store %arg6[%c0_11, %c0_12], %12 {strides = array<i32>} : memref<16x128xf32, #tpu.memory_space<vmem>>, vector<16x128xf32>,
    return
  }
  func.func @transform_0(%arg0: i32) -> (i32, i32) {
    %c0_i32 = arith.constant 0 : i32
    %c0_i32_0 = arith.constant 0 : i32
    return %arg0, %c0_i32 : i32, i32
  }
  func.func @transform_1(%arg0: i32) -> (i32, i32) {
    %c0_i32 = arith.constant 0 : i32
    %c0_i32_0 = arith.constant 0 : i32
    %c0_i32_1 = arith.constant 0 : i32
    return %c0_i32, %c0_i32_0 : i32, i32
  }
  func.func @transform_2(%arg0: i32) -> (i32, i32) {
    %c0_i32 = arith.constant 0 : i32
    %c0_i32_0 = arith.constant 0 : i32
    %c0_i32_1 = arith.constant 0 : i32
    return %c0_i32, %c0_i32_0 : i32, i32
  }
  func.func @transform_3(%arg0: i32) -> (i32, i32) {
    %c0_i32 = arith.constant 0 : i32
    %c0_i32_0 = arith.constant 0 : i32
    %c0_i32_1 = arith.constant 0 : i32
    return %c0_i32, %c0_i32_0 : i32, i32
  }
  func.func @transform_4(%arg0: i32) -> (i32, i32) {
    %c0_i32 = arith.constant 0 : i32
    %c0_i32_0 = arith.constant 0 : i32
    %c0_i32_1 = arith.constant 0 : i32
    return %c0_i32, %c0_i32_0 : i32, i32
  }
  func.func @transform_5(%arg0: i32) -> (i32, i32) {
    %c0_i32 = arith.constant 0 : i32
    %c0_i32_0 = arith.constant 0 : i32
    return %arg0, %c0_i32 : i32, i32
  }
}

</mosaic_0001>

<bundles_post_ra>
// kernel: forward.1
= control target key start
LH: loop header
LB: loop body
LE: loop exit
PB: predicated region body
PF: predicated region fallthrough
CT: control target
= control target key end

     0   :  { %10 = vsyncpa [#allocation3], 0  ;;  %s366_s0 = inlined_call_operand.hbm [shape: f32[16,64], index: 0, kind: input, shape index: {}]   ;;  %s367_s1 = inlined_call_operand.hbm [shape: f32[64,128], index: 1, kind: input, shape index: {}]   ;;  %s368_s2 = inlined_call_operand.vmem [shape: f32[1,128], index: 2, kind: input, shape index: {}]   ;;  %s369_s3 = inlined_call_operand.hbm [shape: f32[128,128], index: 3, kind: input, shape index: {}]   ;;  %s370_s4 = inlined_call_operand.hbm [shape: f32[1,128], index: 4, kind: input, shape index: {}]   ;;  %s371_s5 = inlined_call_operand.vmem [shape: f32[16,128], index: 5, kind: output, shape index: {}]  }
   0x1   :  { %11 = vsyncpa [#allocation5], 0 }
   0x2   :  { %12 = vsyncpa [#allocation8], 0  ;;  %s30_s20 = sshll.u32 %s367_s1, 4  ;;  %s307_s21 = smov [#allocation4]   ;;  %s31_s20 = int_to_ptr.hbm [resolvable:$true] %s30_s20 }
   0x3   :  { %s32_s22 = sshll.u32 %s307_s21, 4  ;;  %s17_s25 = sshll.u32 %s366_s0, 4  ;;  %s33_s22 = int_to_ptr.vmem [resolvable:$true] %s32_s22  ;;  %s18_s25 = int_to_ptr.hbm [resolvable:$true] %s17_s25 }
   0x4   :  { %s308_s26 = smov 128   ;;  %s309_s27 = smov 8  }
   0x5   :  { %38 = dma.hbm_to_vmem [thread:$0]  %s31_s20, 1024, %s33_s22, [#allocation5], %s308_s26, %s308_s26, %s309_s27  }
   0x6   :  { %s310_s28 = smov [#allocation2]   ;;  %s45_s7 = sshll.u32 %s369_s3, 4  ;;  %s46_s7 = int_to_ptr.hbm [resolvable:$true] %s45_s7 }
   0x7   :  { %s19_s29 = sshll.u32 %s310_s28, 4  ;;  %s59_s9 = sshll.u32 %s370_s4, 4  ;;  %s20_s29 = int_to_ptr.vmem [resolvable:$true] %s19_s29  ;;  %s60_s9 = int_to_ptr.hbm [resolvable:$true] %s59_s9 }
   0x8   :  { %25 = dma.hbm_to_vmem [thread:$0]  %s18_s25, 256, %s20_s29, [#allocation3], %s308_s26, %s308_s26, %s309_s27  }
   0x9   :  { %s311_s10 = smov [#allocation6]   ;;  %s312_s0 = smov [#allocation7]  }
   0xa   :  { %s47_s11 = sshll.u32 %s311_s10, 4  ;;  %s61_s12 = sshll.u32 %s312_s0, 4  ;;  %s48_s11 = int_to_ptr.vmem [resolvable:$true] %s47_s11  ;;  %s62_s12 = int_to_ptr.vmem [resolvable:$true] %s61_s12 }
   0xb   :  { %53 = dma.hbm_to_vmem [thread:$0]  %s46_s7, 2048, %s48_s11, [#allocation5], %s308_s26, %s308_s26, %s309_s27  }
   0xc   :  { %64 = dma.hbm_to_vmem [thread:$0]  %s60_s9, 16, %s62_s12, [#allocation8]  }
   0xd   :  { %301 = dma.done.wait [#allocation3], 256  }
   0xe   :  { %302 = vsyncadd [#allocation3], 4294967040 }
   0xf   :  { %303 = dma.done.wait [#allocation5], 3072  }
  0x10   :  { %304 = vsyncadd [#allocation5], 4294964224 }
  0x11   :  { %305 = dma.done.wait [#allocation8], 16  }
  0x12   :  { %306 = vsyncadd [#allocation8], 4294967280  ;;  %v90_v0 = vld [vmem:[#allocation4 + $0x38] sm:$0xff]  ;;  %v89_v1 = vld [vmem:[#allocation4 + $0x30] sm:$0xff]  ;;  %vm95_vm0 = vcmask 523264  }
  0x13   :  { %110 = vmatpush.msra.mxu0 %v90_v0  ;;  %v88_v2 = vld [vmem:[#allocation4 + $0x28] sm:$0xff]  ;;  %v142_v3 = vld [vmem:[#allocation6 + $0x78] sm:$0xff]  ;;  %v141_v4 = vld [vmem:[#allocation6 + $0x70] sm:$0xff] }
  0x14   :  { %v87_v5 = vld [vmem:[#allocation4 + $0x20] sm:$0xff]  ;;  %147 = vmatpush.msra.mxu1 %v142_v3  ;;  %181 = vmatpush.msra.mxu2 %v142_v3  ;;  %v140_v6 = vld [vmem:[#allocation6 + $0x68] sm:$0xff]  ;;  %v86_v7 = vld [vmem:[#allocation4 + $0x18] sm:$0xff] }
  0x15   :  { %111 = vmatpush.msra.mxu0 %v89_v1  ;;  %v139_v8 = vld [vmem:[#allocation6 + $0x60] sm:$0xff]  ;;  %v85_v9 = vld [vmem:[#allocation4 + $0x10] sm:$0xff]  ;;  %v138_v10 = vld [vmem:[#allocation6 + $0x58] sm:$0xff] }
  0x16   :  { %148 = vmatpush.msra.mxu1 %v141_v4  ;;  %182 = vmatpush.msra.mxu2 %v141_v4  ;;  %v84_v11 = vld [vmem:[#allocation4 + $0x8] sm:$0xff]  ;;  %v137_v12 = vld [vmem:[#allocation6 + $0x50] sm:$0xff]  ;;  %v83_v13 = vld [vmem:[#allocation4] sm:$0xff] }
  0x17   :  { %112 = vmatpush.msra.mxu0 %v88_v2  ;;  %v81_v14 = vld [vmem:[#allocation2] sm:$0xff]  ;;  %v136_v15 = vld [vmem:[#allocation6 + $0x48] sm:$0xff]  ;;  %v135_v16 = vld [vmem:[#allocation6 + $0x40] sm:$0xff] }
  0x18   :  { %149 = vmatpush.msra.mxu1 %v140_v6  ;;  %183 = vmatpush.msra.mxu2 %v140_v6  ;;  %v134_v17 = vld [vmem:[#allocation6 + $0x38] sm:$0xff]  ;;  %v133_v18 = vld [vmem:[#allocation6 + $0x30] sm:$0xff]  ;;  %v132_v20 = vld [vmem:[#allocation6 + $0x28] sm:$0xff] }
  0x19   :  { %113 = vmatpush.msra.mxu0 %v87_v5  ;;  %v82_v19 = vld [vmem:[#allocation2 + $0x8] sm:$0xff]  ;;  %v131_v21 = vld [vmem:[#allocation6 + $0x20] sm:$0xff]  ;;  %v129_v23 = vld [vmem:[#allocation6 + $0x10] sm:$0xff] }
  0x1a   :  { %150 = vmatpush.msra.mxu1 %v139_v8  ;;  %184 = vmatpush.msra.mxu2 %v139_v8  ;;  %v130_v22 = vld [vmem:[#allocation6 + $0x18] sm:$0xff]  ;;  %v128_v24 = vld [vmem:[#allocation6 + $0x8] sm:$0xff]  ;;  %v127_v25 = vld [vmem:[#allocation6] sm:$0xff] }
  0x1b   :  { %114 = vmatpush.msra.mxu0 %v86_v7  ;;  %v203_v26 = vld [vmem:[%s368_s2] ss:$0 sm:$0xff]  ;;  %v204_v33 = vld [vmem:[#allocation7] ss:$0 sm:$0xff] }
  0x1c   :  { %151 = vmatpush.msra.mxu1 %v138_v10  ;;  %185 = vmatpush.msra.mxu2 %v138_v10 }
  0x1d   :  { %115 = vmatpush.msra.mxu0 %v85_v9 }
  0x1e   :  { %152 = vmatpush.msra.mxu1 %v137_v12  ;;  %186 = vmatpush.msra.mxu2 %v137_v12 }
  0x1f   :  { %116 = vmatpush.msra.mxu0 %v84_v11 }
  0x20   :  { %153 = vmatpush.msra.mxu1 %v136_v15  ;;  %187 = vmatpush.msra.mxu2 %v136_v15 }
  0x21   :  { %117 = vmatpush.msra.mxu0 %v83_v13 }
  0x22   :  { %179 = vmatmul.msk.f32.vlgmr.msra.gmra.mxu0 %vm95_vm0, %v81_v14  ;;  %154 = vmatpush.msra.mxu1 %v135_v16 }
  0x23   :  { %188 = vmatpush.msra.mxu2 %v135_v16 }
  0x24   :  { %155 = vmatpush.msra.mxu1 %v134_v17 }
  0x25   :  { %189 = vmatpush.msra.mxu2 %v134_v17 }
  0x26   :  { %156 = vmatpush.msra.mxu1 %v133_v18 }
  0x27   :  { %190 = vmatpush.msra.mxu2 %v133_v18 }
  0x28   :  { %157 = vmatpush.msra.mxu1 %v132_v20 }
  0x29   :  { %191 = vmatpush.msra.mxu2 %v132_v20 }
  0x2a   :  { %180 = vmatmul.msk.f32.gmra.mxu0 %vm95_vm0, %v82_v19  ;;  %158 = vmatpush.msra.mxu1 %v131_v21 }
  0x2b   :  { %192 = vmatpush.msra.mxu2 %v131_v21 }
  0x2c   :  { %159 = vmatpush.msra.mxu1 %v130_v22 }
  0x2d   :  { %193 = vmatpush.msra.mxu2 %v130_v22 }
  0x2e   :  { %160 = vmatpush.msra.mxu1 %v129_v23 }
  0x2f   :  { %194 = vmatpush.msra.mxu2 %v129_v23 }
  0x30   :  { %161 = vmatpush.msra.mxu1 %v128_v24 }
  0x31   :  { %195 = vmatpush.msra.mxu2 %v128_v24 }
  0x32   :  { %162 = vmatpush.msra.mxu1 %v127_v25 }
  0x33   :  { %196 = vmatpush.msra.mxu2 %v127_v25 }
  0x9f   :  { %v119_v27 = vpop.f32.mrf.mxu0 }
  0xa0   :  { %v120_v28 = vadd.f32 %v203_v26, %v119_v27 }
  0xa2   :  { %v125_v29 = vmax.f32 %v120_v28, 0.0 }
  0xa4   :  { %163 = vmatmul.f32.vlgmr.msra.gmra.mxu1 %v125_v29 }
  0xa7   :  { %v122_v30 = vpop.f32.mrf.mxu0 }
  0xa8   :  { %v123_v31 = vadd.f32 %v203_v26, %v122_v30 }
  0xaa   :  { %v126_v32 = vmax.f32 %v123_v31, 0.0 }
  0xac   :  { %166 = vmatmul.f32.vlgmr.msra.gmra.mxu2 %v126_v32 }
 0x121   :  { %v164_v34 = vpop.f32.mrf.mxu1 }
 0x122   :  { %v165_v35 = vadd.f32 %v204_v33, %v164_v34 }
 0x124   :  { %170 = vst [vmem:[%s371_s5] sm:$0xff] %v165_v35 }
 0x12f   :  { %v167_v36 = vpop.f32.mrf.mxu2 }
 0x130   :  { %v168_v37 = vadd.f32 %v204_v33, %v167_v36 }
 0x132   :  { %171 = vst [vmem:[%s371_s5 + $0x8] sm:$0xff] %v168_v37 }
 0x133   :  { %176 = vsyncpa [#allocation3], 1 }
 0x134   :  { %177 = vsyncpa [#allocation5], 1 }
 0x135   :  { %178 = vsyncpa [#allocation8], 1 }

</bundles_post_ra>
